<compile_context>
chip_gen: v7x
topology: tpu7x:2x2x1
jax: 0.10.0
libtpu: 0.0.40
codegen_flags: <defaults>
</compile_context>

<pallas_src>
import functools

import jax
import jax.numpy as jnp
from jax.experimental import pallas as pl
from jax.experimental.pallas import tpu as pltpu


PACK = 4  # block-diagonal replication factor (4 batch rows packed per lane row)


# --------------------------------------------------------------------------- #
# Kernel: fused 3-layer MLP on one batch tile.  Weights are block-diagonal
# packed, so every row of `x` holds PACK independent states and each matmul is
# PACK independent GEMMs sharing one MXU push.
# --------------------------------------------------------------------------- #
def actor_kernel(x_ref, w1_ref, b1_ref, w2_ref, b2_ref, w5_ref, b5_ref, o_ref):
    x = x_ref[...]

    # fc1 + ReLU   (f32 accumulation)
    h1 = jnp.maximum(
        jnp.dot(x, w1_ref[...], preferred_element_type=jnp.float32) + b1_ref[...],
        0.0)

    # fc2 + ReLU
    h2 = jnp.maximum(
        jnp.dot(h1.astype(w2_ref.dtype), w2_ref[...],
                preferred_element_type=jnp.float32) + b2_ref[...],
        0.0)

    # fc5 + tanh (tanh runs on the EUP, off the VALU critical path)
    out = jnp.tanh(
        jnp.dot(h2.astype(w5_ref.dtype), w5_ref[...],
                preferred_element_type=jnp.float32) + b5_ref[...])

    o_ref[...] = out.astype(o_ref.dtype)


# --------------------------------------------------------------------------- #
# Weight packing (done once at init, outside the kernel).
# --------------------------------------------------------------------------- #
def _block_diag(w, pack):
    """(fin, fout) -> (pack*fin, pack*fout) block-diagonal replication."""
    fin, fout = w.shape
    out = jnp.zeros((pack * fin, pack * fout), w.dtype)
    for p in range(pack):
        out = out.at[p * fin:(p + 1) * fin, p * fout:(p + 1) * fout].set(w)
    return out


def pack_actor_params(params, pack=PACK):
    """Block-diagonal pack weights and tile biases.  Call once at init."""
    w1, b1, w2, b2, w5, b5 = params
    return (_block_diag(w1, pack), jnp.tile(b1, (1, pack)),
            _block_diag(w2, pack), jnp.tile(b2, (1, pack)),
            _block_diag(w5, pack), jnp.tile(b5, (1, pack)))


# --------------------------------------------------------------------------- #
# Forward pass.
# --------------------------------------------------------------------------- #
def actor_forward(state, packed_params, *, pack=PACK, max_tile_rows=512,
                  compute_dtype=jnp.float32):
    """state: (B, state_size) float32 -> (B, action_size) float32."""
    w1p, b1p, w2p, b2p, w5p, b5p = packed_params
    B, state_size = state.shape
    assert w1p.shape[0] == pack * state_size, "packed params do not match state_size"
    action_size = w5p.shape[1] // pack

    feat_in = pack * state_size
    feat_out = pack * action_size

    # --- pack the batch lane-dense: (B, S) -> (rows, pack*S) -----------------
    b_pad = pl.cdiv(B, pack) * pack
    if b_pad != B:
        state = jnp.pad(state, ((0, b_pad - B), (0, 0)))
    rows = b_pad // pack
    x_packed = state.reshape(rows, feat_in)

    # --- row tiling: multiple of 8 sublanes, capped for VMEM/vreg pressure ---
    tile_rows = min(max_tile_rows, pl.cdiv(rows, 8) * 8)
    rows_pad = pl.cdiv(rows, tile_rows) * tile_rows
    if rows_pad != rows:
        x_packed = jnp.pad(x_packed, ((0, rows_pad - rows), (0, 0)))

    # --- optional bf16 operands (f32 accumulation is kept inside the kernel) -
    if compute_dtype != jnp.float32:
        x_packed = x_packed.astype(compute_dtype)
        w1p = w1p.astype(compute_dtype)
        w2p = w2p.astype(compute_dtype)
        w5p = w5p.astype(compute_dtype)

    grid = (rows_pad // tile_rows,)

    out_packed = pl.pallas_call(
        actor_kernel,
        out_shape=jax.ShapeDtypeStruct((rows_pad, feat_out), jnp.float32),
        grid=grid,
        in_specs=[
            # state tile: pipelined / double-buffered over the batch grid
            pl.BlockSpec((tile_rows, feat_in), lambda i: (i, 0)),
            # weights & biases: full arrays, constant block index across the
            # grid -> VMEM-resident, no re-DMA per step
            pl.BlockSpec(w1p.shape, lambda i: (0, 0)),
            pl.BlockSpec(b1p.shape, lambda i: (0, 0)),
            pl.BlockSpec(w2p.shape, lambda i: (0, 0)),
            pl.BlockSpec(b2p.shape, lambda i: (0, 0)),
            pl.BlockSpec(w5p.shape, lambda i: (0, 0)),
            pl.BlockSpec(b5p.shape, lambda i: (0, 0)),
        ],
        out_specs=pl.BlockSpec((tile_rows, feat_out), lambda i: (i, 0)),
        compiler_params=pltpu.CompilerParams(
            dimension_semantics=("parallel",)),  # batch shards across 2 TCs on v7x
    )(x_packed, w1p, b1p, w2p, b2p, w5p, b5p)

    # --- unpack: (rows, pack*A) -> (B, A) -------------------------------------
    out = out_packed[:rows].reshape(b_pad, action_size)[:B]
    return out


# --------------------------------------------------------------------------- #
# Parameter init mimicking PyTorch Linear default (U[-1/sqrt(fan_in), +]).
# Weights stored as (in_features, out_features), so y = x @ W + b matches
# PyTorch's x @ W.T + b with its (out, in) layout.
# --------------------------------------------------------------------------- #
def init_actor_params(key, state_size, action_size, hidden1=32, hidden2=32):
    def linear_init(k, fan_in, fan_out):
        kw, kb = jax.random.split(k)
        bound = 1.0 / jnp.sqrt(fan_in)
        w = jax.random.uniform(kw, (fan_in, fan_out), jnp.float32, -bound, bound)
        b = jax.random.uniform(kb, (1, fan_out), jnp.float32, -bound, bound)
        return w, b

    k1, k2, k3 = jax.random.split(key, 3)
    w1, b1 = linear_init(k1, state_size, hidden1)
    w2, b2 = linear_init(k2, hidden1, hidden2)
    w5, b5 = linear_init(k3, hidden2, action_size)
    return (w1, b1, w2, b2, w5, b5)


if __name__ == "__main__":
    key = jax.random.PRNGKey(0)
    k_params, k_state, k_state2 = jax.random.split(key, 3)

    batch = 8
    state_size = 16
    action_size = 4

    params = init_actor_params(k_params, state_size, action_size)
    packed = pack_actor_params(params, pack=PACK)

    def reference(s):
        w1, b1, w2, b2, w5, b5 = params
        h = jnp.maximum(s @ w1 + b1, 0.0)
        h = jnp.maximum(h @ w2 + b2, 0.0)
        return jnp.tanh(h @ w5 + b5)

    fwd = jax.jit(functools.partial(actor_forward, packed_params=packed))

    # Main check.
    state = jax.random.normal(k_state, (batch, state_size), jnp.float32)
    out = jax.block_until_ready(fwd(state))
    assert out.shape == (batch, action_size)
    assert jnp.allclose(out, reference(state), atol=1e-5), "mismatch vs reference"

    # Check exercising the pack/tile padding path (B not a multiple of 4).
    state2 = jax.random.normal(k_state2, (batch + 3, state_size), jnp.float32)
    out2 = jax.block_until_ready(actor_forward(state2, packed))
    assert out2.shape == (batch + 3, action_size)
    assert jnp.allclose(out2, reference(state2), atol=1e-5), "mismatch vs reference (padded)"

    print("KERNEL_OK")
</pallas_src>

<mosaic_0001>
module attributes {stable_mosaic.version = 11 : i64} {
  func.func @actor_kernel(%arg0: i32, %arg1: memref<8x64xf32, #tpu.memory_space<vmem>>, %arg2: memref<64x128xf32, #tpu.memory_space<vmem>>, %arg3: memref<1x128xf32, #tpu.memory_space<vmem>>, %arg4: memref<128x128xf32, #tpu.memory_space<vmem>>, %arg5: memref<1x128xf32, #tpu.memory_space<vmem>>, %arg6: memref<128x16xf32, #tpu.memory_space<vmem>>, %arg7: memref<1x16xf32, #tpu.memory_space<vmem>>, %arg8: memref<8x16xf32, #tpu.memory_space<vmem>>) attributes {dimension_semantics = [#tpu.dimension_semantics<parallel>], iteration_bounds = array<i64: 1>, scalar_prefetch = 0 : i64, scratch_operands = 0 : i64, tpu.core_type = #tpu.core_type<tc>, window_params = [{transform_indices = @transform_0, window_bounds = array<i64: 8, 64>}, {pipeline_mode = #tpu.pipeline_mode<synchronous>, transform_indices = @transform_1, window_bounds = array<i64: 64, 128>}, {pipeline_mode = #tpu.pipeline_mode<synchronous>, transform_indices = @transform_2, window_bounds = array<i64: 1, 128>}, {pipeline_mode = #tpu.pipeline_mode<synchronous>, transform_indices = @transform_3, window_bounds = array<i64: 128, 128>}, {pipeline_mode = #tpu.pipeline_mode<synchronous>, transform_indices = @transform_4, window_bounds = array<i64: 1, 128>}, {pipeline_mode = #tpu.pipeline_mode<synchronous>, transform_indices = @transform_5, window_bounds = array<i64: 128, 16>}, {pipeline_mode = #tpu.pipeline_mode<synchronous>, transform_indices = @transform_6, window_bounds = array<i64: 1, 16>}, {transform_indices = @transform_7, window_bounds = array<i64: 8, 16>}]} {
    %c0 = arith.constant 0 : index
    %c0_0 = arith.constant 0 : index
    %0 = vector.load %arg1[%c0, %c0_0] : memref<8x64xf32, #tpu.memory_space<vmem>>, vector<8x64xf32>
    %c0_1 = arith.constant 0 : index
    %c0_2 = arith.constant 0 : index
    %1 = vector.load %arg2[%c0_1, %c0_2] : memref<64x128xf32, #tpu.memory_space<vmem>>, vector<64x128xf32>
    %cst = arith.constant dense<0.000000e+00> : vector<8x128xf32>
    %2 = tpu.matmul %0, %1, %cst {dimension_numbers = #tpu.dot_dimension_numbers<[1], [0], [0], [1], [0, 0, 1, 1], [], []>} : vector<8x64xf32>, vector<64x128xf32>, vector<8x128xf32> -> vector<8x128xf32>
    %c0_3 = arith.constant 0 : index
    %c0_4 = arith.constant 0 : index
    %3 = vector.load %arg3[%c0_3, %c0_4] : memref<1x128xf32, #tpu.memory_space<vmem>>, vector<1x128xf32>
    %4 = vector.broadcast %3 : vector<1x128xf32> to vector<8x128xf32>
    %5 = arith.addf %2, %4 : vector<8x128xf32>
    %cst_5 = arith.constant 0.000000e+00 : f32
    %6 = vector.broadcast %cst_5 : f32 to vector<8x128xf32>
    %7 = arith.maximumf %5, %6 : vector<8x128xf32>
    %c0_6 = arith.constant 0 : index
    %c0_7 = arith.constant 0 : index
    %8 = vector.load %arg4[%c0_6, %c0_7] : memref<128x128xf32, #tpu.memory_space<vmem>>, vector<128x128xf32>
    %cst_8 = arith.constant dense<0.000000e+00> : vector<8x128xf32>
    %9 = tpu.matmul %7, %8, %cst_8 {dimension_numbers = #tpu.dot_dimension_numbers<[1], [0], [0], [1], [0, 0, 1, 1], [], []>} : vector<8x128xf32>, vector<128x128xf32>, vector<8x128xf32> -> vector<8x128xf32>
    %c0_9 = arith.constant 0 : index
    %c0_10 = arith.constant 0 : index
    %10 = vector.load %arg5[%c0_9, %c0_10] : memref<1x128xf32, #tpu.memory_space<vmem>>, vector<1x128xf32>
    %11 = vector.broadcast %10 : vector<1x128xf32> to vector<8x128xf32>
    %12 = arith.addf %9, %11 : vector<8x128xf32>
    %cst_11 = arith.constant 0.000000e+00 : f32
    %13 = vector.broadcast %cst_11 : f32 to vector<8x128xf32>
    %14 = arith.maximumf %12, %13 : vector<8x128xf32>
    %c0_12 = arith.constant 0 : index
    %c0_13 = arith.constant 0 : index
    %15 = vector.load %arg6[%c0_12, %c0_13] : memref<128x16xf32, #tpu.memory_space<vmem>>, vector<128x16xf32>
    %cst_14 = arith.constant dense<0.000000e+00> : vector<8x16xf32>
    %16 = tpu.matmul %14, %15, %cst_14 {dimension_numbers = #tpu.dot_dimension_numbers<[1], [0], [0], [1], [0, 0, 1, 1], [], []>} : vector<8x128xf32>, vector<128x16xf32>, vector<8x16xf32> -> vector<8x16xf32>
    %c0_15 = arith.constant 0 : index
    %c0_16 = arith.constant 0 : index
    %17 = vector.load %arg7[%c0_15, %c0_16] : memref<1x16xf32, #tpu.memory_space<vmem>>, vector<1x16xf32>
    %18 = vector.broadcast %17 : vector<1x16xf32> to vector<8x16xf32>
    %19 = arith.addf %16, %18 : vector<8x16xf32>
    %20 = math.tanh %19 : vector<8x16xf32>
    %c0_17 = arith.constant 0 : index
    %c0_18 = arith.constant 0 : index
    %21 = vector.load %arg8[%c0_17, %c0_18] : memref<8x16xf32, #tpu.memory_space<vmem>>, vector<8x16xf32>
    tpu.vector_store %arg8[%c0_17, %c0_18], %20 {strides = array<i32>} : memref<8x16xf32, #tpu.memory_space<vmem>>, vector<8x16xf32>,
    return
  }
  func.func @transform_0(%arg0: i32) -> (i32, i32) {
    %c0_i32 = arith.constant 0 : i32
    %c0_i32_0 = arith.constant 0 : i32
    return %arg0, %c0_i32 : i32, i32
  }
  func.func @transform_1(%arg0: i32) -> (i32, i32) {
    %c0_i32 = arith.constant 0 : i32
    %c0_i32_0 = arith.constant 0 : i32
    %c0_i32_1 = arith.constant 0 : i32
    return %c0_i32, %c0_i32_0 : i32, i32
  }
  func.func @transform_2(%arg0: i32) -> (i32, i32) {
    %c0_i32 = arith.constant 0 : i32
    %c0_i32_0 = arith.constant 0 : i32
    %c0_i32_1 = arith.constant 0 : i32
    return %c0_i32, %c0_i32_0 : i32, i32
  }
  func.func @transform_3(%arg0: i32) -> (i32, i32) {
    %c0_i32 = arith.constant 0 : i32
    %c0_i32_0 = arith.constant 0 : i32
    %c0_i32_1 = arith.constant 0 : i32
    return %c0_i32, %c0_i32_0 : i32, i32
  }
  func.func @transform_4(%arg0: i32) -> (i32, i32) {
    %c0_i32 = arith.constant 0 : i32
    %c0_i32_0 = arith.constant 0 : i32
    %c0_i32_1 = arith.constant 0 : i32
    return %c0_i32, %c0_i32_0 : i32, i32
  }
  func.func @transform_5(%arg0: i32) -> (i32, i32) {
    %c0_i32 = arith.constant 0 : i32
    %c0_i32_0 = arith.constant 0 : i32
    %c0_i32_1 = arith.constant 0 : i32
    return %c0_i32, %c0_i32_0 : i32, i32
  }
  func.func @transform_6(%arg0: i32) -> (i32, i32) {
    %c0_i32 = arith.constant 0 : i32
    %c0_i32_0 = arith.constant 0 : i32
    %c0_i32_1 = arith.constant 0 : i32
    return %c0_i32, %c0_i32_0 : i32, i32
  }
  func.func @transform_7(%arg0: i32) -> (i32, i32) {
    %c0_i32 = arith.constant 0 : i32
    %c0_i32_0 = arith.constant 0 : i32
    return %arg0, %c0_i32 : i32, i32
  }
}

</mosaic_0001>

<bundles_post_ra>
// kernel: actor_forward.1
= control target key start
LH: loop header
LB: loop body
LE: loop exit
PB: predicated region body
PF: predicated region fallthrough
CT: control target
= control target key end

     0   :  { %12 = vsyncpa [#allocation3], 0  ;;  %s768_s0 = inlined_call_operand.vmem [shape: f32[8,64], index: 0, kind: input, shape index: {}]   ;;  %s769_s1 = inlined_call_operand.hbm [shape: f32[64,128], index: 1, kind: input, shape index: {}]   ;;  %s770_s2 = inlined_call_operand.vmem [shape: f32[1,128], index: 2, kind: input, shape index: {}]   ;;  %s771_s3 = inlined_call_operand.hbm [shape: f32[128,128], index: 3, kind: input, shape index: {}]   ;;  %s772_s4 = inlined_call_operand.vmem [shape: f32[1,128], index: 4, kind: input, shape index: {}]   ;;  %s773_s5 = inlined_call_operand.hbm [shape: f32[128,16], index: 5, kind: input, shape index: {}]   ;;  %s774_s6 = inlined_call_operand.vmem [shape: f32[1,16], index: 6, kind: input, shape index: {}]   ;;  %s775_s7 = inlined_call_operand.vmem [shape: f32[8,16], index: 7, kind: output, shape index: {}]  }
   0x1   :  { %13 = vsyncpa [#allocation5], 0  ;;  %s630_s24 = smov [#allocation4]   ;;  %s631_s26 = smov [#allocation2]  }
   0x2   :  { %s35_s25 = sshll.u32 %s630_s24, 4  ;;  %s21_s27 = sshll.u32 %s631_s26, 4  ;;  %s36_s25 = int_to_ptr.vmem [resolvable:$true] %s35_s25  ;;  %s678_s27 = int_to_ptr.vmem [resolvable:$true] %s21_s27 }
   0x3   :  { %s560_s30 = scalar_lea.hbm %s771_s3, 2048 }
   0x4   :  { %p561_p0 = scmp.ne.s32.totalorder %s771_s3, %s560_s30  ;;  %p564_p1 = scmp.lt.u32.totalorder %s560_s30, %s771_s3 }
   0x6   :  { %p566_p2 = pnand %p564_p1, %p561_p0 }
   0x8   :  { %569 = shalt.err (!%p566_p2)
}
   0x9   :  { %s570_s12 = scalar_lea.vmem %s36_s25, 2048  ;;  %p575_p4 = scmp.lt.s32.totalorder %s36_s25, %s36_s25 }
   0xa   :  { %p571_p3 = scmp.ne.s32.totalorder %s36_s25, %s570_s12  ;;  %p576_p5 = scmp.lt.s32.totalorder %s570_s12, %s570_s12 }
   0xc   :  { %p577_p6 = por %p576_p5, %p575_p4 }
   0xe   :  { %p578_p7 = pnand %p577_p6, %p571_p3 }
  0x10   :  { %581 = shalt.err (!%p578_p7)
}
  0x11   :  { %s632_s13 = smov 128   ;;  %s633_s14 = smov 8  }
  0x12   :  { %41 = dma.hbm_to_vmem [thread:$0]  %s771_s3, 2048, %s36_s25, [#allocation5], %s632_s13, %s632_s13, %s633_s14  }
  0x13   :  { %s582_s19 = scalar_lea.hbm %s769_s1, 1024 }
  0x14   :  { %p583_p8 = scmp.ne.s32.totalorder %s769_s1, %s582_s19  ;;  %p586_p9 = scmp.lt.u32.totalorder %s582_s19, %s769_s1 }
  0x16   :  { %p588_p10 = pnand %p586_p9, %p583_p8 }
  0x18   :  { %591 = shalt.err (!%p588_p10)
}
  0x19   :  { %s592_s24 = scalar_lea.vmem %s678_s27, 1024  ;;  %p597_p12 = scmp.lt.s32.totalorder %s678_s27, %s678_s27 }
  0x1a   :  { %p593_p11 = scmp.ne.s32.totalorder %s678_s27, %s592_s24  ;;  %p598_p13 = scmp.lt.s32.totalorder %s592_s24, %s592_s24 }
  0x1c   :  { %p599_p0 = por %p598_p13, %p597_p12 }
  0x1e   :  { %p600_p1 = pnand %p599_p0, %p593_p11 }
  0x20   :  { %603 = shalt.err (!%p600_p1)
}
  0x21   :  { %27 = dma.hbm_to_vmem [thread:$0]  %s769_s1, 1024, %s678_s27, [#allocation3], %s632_s13, %s632_s13, %s633_s14  }
  0x22   :  { %s634_s26 = smov [#allocation6]   ;;  %s604_s8 = scalar_lea.hbm %s773_s5, 2048 }
  0x23   :  { %s49_s28 = sshll.u32 %s634_s26, 4  ;;  %p605_p2 = scmp.ne.s32.totalorder %s773_s5, %s604_s8  ;;  %s50_s28 = int_to_ptr.vmem [resolvable:$true] %s49_s28 }
  0x24   :  { %p608_p3 = scmp.lt.u32.totalorder %s604_s8, %s773_s5 }
  0x26   :  { %p610_p4 = pnand %p608_p3, %p605_p2 }
  0x28   :  { %613 = shalt.err (!%p610_p4)
}
  0x29   :  { %s614_s15 = scalar_lea.vmem %s50_s28, 2048  ;;  %p619_p6 = scmp.lt.s32.totalorder %s50_s28, %s50_s28 }
  0x2a   :  { %p615_p5 = scmp.ne.s32.totalorder %s50_s28, %s614_s15  ;;  %p620_p7 = scmp.lt.s32.totalorder %s614_s15, %s614_s15 }
  0x2c   :  { %p621_p8 = por %p620_p7, %p619_p6 }
  0x2e   :  { %p622_p9 = pnand %p621_p8, %p615_p5 }
  0x30   :  { %625 = shalt.err (!%p622_p9)
}
  0x31   :  { %55 = dma.hbm_to_vmem [thread:$0]  %s773_s5, 2048, %s50_s28, [#allocation5], %s632_s13, %s632_s13, %s633_s14  }
  0x32   :  { %626 = dma.done.wait [#allocation3], 1024  }
  0x33   :  { %627 = vsyncadd [#allocation3], 4294966272 }
  0x34   :  { %628 = dma.done.wait [#allocation5], 4096  }
  0x35   :  { %629 = vsyncadd [#allocation5], 4294963200  ;;  %v635_v0 = vmov 0.0|0.0   ;;  %vm636_vm0 = vmmov 0   ;;  %v637_v1 = vmov 0.0   ;;  %v68_v2 = vld [vmem:[#allocation2] sm:$0xff] }
  0x36   :  { %490 = vmatprep.subr.bf16.mxu0 %v635_v0  ;;  %417 = vmatprep.mubr.msk.f32.mxu0 %vm636_vm0, %v637_v1  ;;  %v69_v3 = vld [vmem:[#allocation2 + $0x8] sm:$0xff]  ;;  %v70_v4 = vld [vmem:[#allocation2 + $0x10] sm:$0xff]  ;;  %v71_v6 = vld [vmem:[#allocation2 + $0x18] sm:$0xff]  ;;  %vm83_vm1 = vcmask 523264   ;;  %vm346_vm2 = vcmask 130048  }
  0x37   :  { %502 = vmatprep.subr.bf16.mxu1 %v635_v0  ;;  %452 = vmatprep.mubr.msk.f32.mxu1 %vm636_vm0, %v637_v1  ;;  %v491_v5 = vpack.c.bf16 %v69_v3, %v68_v2  ;;  %v494_v7 = vpack.c.bf16 %v71_v6, %v70_v4  ;;  %v158_v8 = vld [vmem:[#allocation4] sm:$0xff]  ;;  %v159_v9 = vld [vmem:[#allocation4 + $0x8] sm:$0xff]  ;;  %v160_v10 = vld [vmem:[#allocation4 + $0x10] sm:$0xff] }
  0x38   :  { %v72_v11 = vld [vmem:[#allocation2 + $0x20] sm:$0xff]  ;;  %v73_v12 = vld [vmem:[#allocation2 + $0x28] sm:$0xff]  ;;  %v503_v13 = vpack.c.bf16 %v159_v9, %v158_v8  ;;  %v161_v14 = vld [vmem:[#allocation4 + $0x18] sm:$0xff] }
  0x39   :  { %492 = vmatpush3.bf16.msra.mxu0 %v491_v5  ;;  %v506_v15 = vpack.c.bf16 %v161_v14, %v160_v10  ;;  %v497_v16 = vpack.c.bf16 %v73_v12, %v72_v11  ;;  %v162_v17 = vld [vmem:[#allocation4 + $0x20] sm:$0xff]  ;;  %v163_v18 = vld [vmem:[#allocation4 + $0x28] sm:$0xff]  ;;  %v74_v19 = vld [vmem:[#allocation2 + $0x30] sm:$0xff] }
  0x3a   :  { %493 = vmatprep.subr.bf16.mxu0 %v635_v0  ;;  %504 = vmatpush3.bf16.msra.mxu1 %v503_v13  ;;  %v75_v20 = vld [vmem:[#allocation2 + $0x38] sm:$0xff]  ;;  %v509_v21 = vpack.c.bf16 %v163_v18, %v162_v17  ;;  %v164_v23 = vld [vmem:[#allocation4 + $0x30] sm:$0xff]  ;;  %v67_v26 = vld [vmem:[%s768_s0] sm:$0xff] }
  0x3b   :  { %505 = vmatprep.subr.bf16.mxu1 %v635_v0  ;;  %v500_v22 = vpack.c.bf16 %v75_v20, %v74_v19  ;;  %v165_v24 = vld [vmem:[#allocation4 + $0x38] sm:$0xff]  ;;  %v166_v27 = vld [vmem:[#allocation4 + $0x40] sm:$0xff]  ;;  %v167_v28 = vld [vmem:[#allocation4 + $0x48] sm:$0xff] }
  0x3c   :  { %v512_v25 = vpack.c.bf16 %v165_v24, %v164_v23  ;;  %v515_v29 = vpack.c.bf16 %v167_v28, %v166_v27  ;;  %v168_v30 = vld [vmem:[#allocation4 + $0x50] sm:$0xff]  ;;  %v169_v31 = vld [vmem:[#allocation4 + $0x58] sm:$0xff]  ;;  %v170_v33 = vld [vmem:[#allocation4 + $0x60] sm:$0xff] }
  0x3d   :  { %495 = vmatpush3.bf16.msra.mxu0 %v494_v7  ;;  %v518_v32 = vpack.c.bf16 %v169_v31, %v168_v30  ;;  %v171_v34 = vld [vmem:[#allocation4 + $0x68] sm:$0xff]  ;;  %v172_v36 = vld [vmem:[#allocation4 + $0x70] sm:$0xff]  ;;  %v173_v37 = vld [vmem:[#allocation4 + $0x78] sm:$0xff] }
  0x3e   :  { %496 = vmatprep.subr.bf16.mxu0 %v635_v0  ;;  %507 = vmatpush3.bf16.msra.mxu1 %v506_v15  ;;  %v521_v35 = vpack.c.bf16 %v171_v34, %v170_v33  ;;  %v524_v38 = vpack.c.bf16 %v173_v37, %v172_v36  ;;  %v252_v39 = vld [vmem:[#allocation6] sm:$0xff]  ;;  %v253_v40 = vld [vmem:[#allocation6 + $0x8] sm:$0xff]  ;;  %v254_v41 = vld [vmem:[#allocation6 + $0x10] sm:$0xff] }
  0x3f   :  { %508 = vmatprep.subr.bf16.mxu1 %v635_v0  ;;  %v527_v42 = vpack.c.bf16 %v253_v40, %v252_v39  ;;  %v255_v43 = vld [vmem:[#allocation6 + $0x18] sm:$0xff]  ;;  %v256_v45 = vld [vmem:[#allocation6 + $0x20] sm:$0xff]  ;;  %v257_v46 = vld [vmem:[#allocation6 + $0x28] sm:$0xff] }
  0x40   :  { %v530_v44 = vpack.c.bf16 %v255_v43, %v254_v41  ;;  %v533_v47 = vpack.c.bf16 %v257_v46, %v256_v45  ;;  %v258_v48 = vld [vmem:[#allocation6 + $0x30] sm:$0xff]  ;;  %v259_v49 = vld [vmem:[#allocation6 + $0x38] sm:$0xff]  ;;  %v260_v51 = vld [vmem:[#allocation6 + $0x40] sm:$0xff] }
  0x41   :  { %498 = vmatpush3.bf16.msra.mxu0 %v497_v16  ;;  %v536_v50 = vpack.c.bf16 %v259_v49, %v258_v48  ;;  %v261_v52 = vld [vmem:[#allocation6 + $0x48] sm:$0xff]  ;;  %v262_v54 = vld [vmem:[#allocation6 + $0x50] sm:$0xff]  ;;  %v263_v55 = vld [vmem:[#allocation6 + $0x58] sm:$0xff] }
  0x42   :  { %499 = vmatprep.subr.bf16.mxu0 %v635_v0  ;;  %510 = vmatpush3.bf16.msra.mxu1 %v509_v21  ;;  %v539_v53 = vpack.c.bf16 %v261_v52, %v260_v51  ;;  %v542_v56 = vpack.c.bf16 %v263_v55, %v262_v54  ;;  %v264_v57 = vld [vmem:[#allocation6 + $0x60] sm:$0xff]  ;;  %v265_v58 = vld [vmem:[#allocation6 + $0x68] sm:$0xff]  ;;  %v266_v2 = vld [vmem:[#allocation6 + $0x70] sm:$0xff] }
  0x43   :  { %511 = vmatprep.subr.bf16.mxu1 %v635_v0  ;;  %v545_v59 = vpack.c.bf16 %v265_v58, %v264_v57  ;;  %v354_v60 = vld [vmem:[%s770_s2] ss:$0 sm:$0xff]  ;;  %v267_v3 = vld [vmem:[#allocation6 + $0x78] sm:$0xff] }
  0x44   :  { %v548_v4 = vpack.c.bf16 %v267_v3, %v266_v2  ;;  %v356_v5 = vld [vmem:[%s772_s4] ss:$0 sm:$0xff] }
  0x45   :  { %501 = vmatpush3.bf16.msra.mxu0 %v500_v22  ;;  %v357_v9 = vld [vmem:[%s774_s6] ss:$0 sm:$0xff] }
  0x46   :  { %526 = vmatprep.subr.bf16.mxu0 %v635_v0  ;;  %513 = vmatpush3.bf16.msra.mxu1 %v512_v25 }
  0x47   :  { %514 = vmatprep.subr.bf16.mxu1 %v635_v0 }
  0x48   :  { %418 = vmatmul.mubr.msk.f32.vlgmr.msra.gmra.mrb[0].mxu0 %vm83_vm1, %v67_v26 }
  0x49   :  { %487 = vmatprep.mubr.msk.f32.mxu0 %vm636_vm0, %v637_v1  ;;  %528 = vmatpush3.bf16.msra.mxu0 %v527_v42 }
  0x4a   :  { %516 = vmatpush3.bf16.msra.mxu1 %v515_v29  ;;  %529 = vmatprep.subr.bf16.mxu0 %v635_v0 }
  0x4b   :  { %517 = vmatprep.subr.bf16.mxu1 %v635_v0 }
  0x4d   :  { %531 = vmatpush3.bf16.msra.mxu0 %v530_v44 }
  0x4e   :  { %519 = vmatpush3.bf16.msra.mxu1 %v518_v32  ;;  %532 = vmatprep.subr.bf16.mxu0 %v635_v0 }
  0x4f   :  { %520 = vmatprep.subr.bf16.mxu1 %v635_v0 }
  0x51   :  { %534 = vmatpush3.bf16.msra.mxu0 %v533_v47 }
  0x52   :  { %522 = vmatpush3.bf16.msra.mxu1 %v521_v35  ;;  %535 = vmatprep.subr.bf16.mxu0 %v635_v0 }
  0x53   :  { %523 = vmatprep.subr.bf16.mxu1 %v635_v0 }
  0x55   :  { %537 = vmatpush3.bf16.msra.mxu0 %v536_v50 }
  0x56   :  { %525 = vmatpush3.bf16.msra.mxu1 %v524_v38  ;;  %538 = vmatprep.subr.bf16.mxu0 %v635_v0 }
  0x59   :  { %540 = vmatpush3.bf16.msra.mxu0 %v539_v53 }
  0x5a   :  { %541 = vmatprep.subr.bf16.mxu0 %v635_v0 }
  0x5d   :  { %543 = vmatpush3.bf16.msra.mxu0 %v542_v56 }
  0x5e   :  { %544 = vmatprep.subr.bf16.mxu0 %v635_v0 }
  0x61   :  { %546 = vmatpush3.bf16.msra.mxu0 %v545_v59 }
  0x62   :  { %547 = vmatprep.subr.bf16.mxu0 %v635_v0 }
  0x65   :  { %549 = vmatpush3.bf16.msra.mxu0 %v548_v4 }
 0x11b   :  { %v153_v61 = vpop.f32.mrb[0].mxu0 }
 0x11c   :  { %v154_v62 = vadd.f32 %v354_v60, %v153_v61  ;;  %v419_v63 = vpop.f32.mrb[1].mxu0 }
 0x11e   :  { %v157_v1 = vmax.f32 %v154_v62, 0.0 }
 0x120   :  { %453 = vmatmul.mubr.f32.vlgmr.msra.gmra.mrb[0].mxu1 %v157_v1 }
 0x1f3   :  { %v247_v6 = vpop.f32.mrb[0].mxu1 }
 0x1f4   :  { %v248_v7 = vadd.f32 %v356_v5, %v247_v6  ;;  %v454_v0 = vpop.f32.mrb[1].mxu1 }
 0x1f6   :  { %v251_v8 = vmax.f32 %v248_v7, 0.0 }
 0x1f8   :  { %488 = vmatmul.mubr.f32.vlgmr.msra.gmra.mrb[2].mxu0 %v251_v8 }
 0x2cb   :  { %v341_v10 = vpop.f32.mrb[2].mxu0 }
 0x2cc   :  { %v342_v11 = vadd.f32 %v357_v9, %v341_v10  ;;  %v489_v12 = vpop.f32.mrb[3].mxu0 }
 0x2ce   :  { %558 = vtanh.f32 %v342_v11 }
 0x2d8   :  { %v559_v13 = vpop.eup %558 }
 0x2d9   :  { %347 = vst.msk [vmem:[%s775_s7] sm:$0xff] %vm346_vm2, %v559_v13 }
 0x2da   :  { %352 = vsyncpa [#allocation3], 1 }
 0x2db   :  { %353 = vsyncpa [#allocation5], 1 }

</bundles_post_ra>
